<compile_context>
chip_gen: v7x
topology: tpu7x:2x2x1
jax: 0.10.0
libtpu: 0.0.40
codegen_flags: <defaults>
</compile_context>

<pallas_src>
import jax
import jax.numpy as jnp
import numpy as np
from jax import lax
from jax.experimental import pallas as pl
from jax.experimental.pallas import tpu as pltpu


def _round_up(x, mult):
    return ((x + mult - 1) // mult) * mult


def product_kernel(sel_ref, d_ref, out_ref):
    # sel_ref : (n1+n2, m) constant 0/1 selection matrix (VMEM-resident, constant index_map)
    # d_ref   : (bt, n1+n2) = [dists1 | dists2] rows of this batch tile
    # out_ref : (bt, m) with m = n1*n2; out[b, i2*n1+i1] = d1[b, i1] + d2[b, i2]
    out_ref[...] = jnp.dot(
        d_ref[...],
        sel_ref[...],
        preferred_element_type=jnp.float32,
        precision=lax.Precision.HIGHEST,   # exact: each output = two products by 1.0, f32 acc
    ).astype(out_ref.dtype)


def _vmem_limit_bytes():
    # 32 MiB is safe everywhere (v7x has only 64 MiB physical VMEM per TensorCore);
    # raise to 64 MiB only when the chip has 128 MiB VMEM (v5e / v6e).
    try:
        cap = pltpu.get_tpu_info().vmem_capacity_bytes
    except Exception:
        cap = 64 * 1024 * 1024
    return 64 * 1024 * 1024 if cap >= 128 * 1024 * 1024 else 32 * 1024 * 1024


def _choose_batch_tile(batch, n_in, m, itemsize, vmem_limit):
    """Largest sublane-aligned batch tile whose double-buffered input + output blocks
    (including the 128-lane padding of the narrow input block) fit comfortably inside
    the scoped VMEM limit; when tiling, steps are balanced to avoid a tiny tail block."""
    sublane = max(8, 32 // max(1, itemsize))          # 8 for f32, 16 for bf16, 32 for int8/fp8
    lanes_out = _round_up(m, 128)
    lanes_in = _round_up(n_in, 128)
    budget = int(vmem_limit * 0.75)                   # headroom for Mosaic scratch + S matrix
    per_row = 2 * (lanes_out + lanes_in) * itemsize   # 2x = double buffering of in + out
    cap = max(sublane, budget // per_row)
    cap = max(sublane, (cap // sublane) * sublane)
    if batch <= cap:
        return batch                                  # full-extent first dim is always legal
    steps = pl.cdiv(batch, cap)                       # balance blocks across grid steps
    bt = _round_up(pl.cdiv(batch, steps), sublane)
    return min(bt, cap)


def product_forward(inputs, params=None, marginalized=None, *, force_kernel=False):
    """JAX/Pallas equivalent of ProductTensor.forward (params is unused, as in torch)."""
    d1, d2 = inputs[0], inputs[1]
    batch, n1 = d1.shape
    n2 = d2.shape[1]
    m = n1 * n2
    out_dtype = jnp.result_type(d1.dtype, d2.dtype)
    itemsize = jnp.dtype(out_dtype).itemsize

    # Tiny-problem fallback: fixed pallas_call + pipeline overhead dominates sub-MiB
    # outputs; XLA's fused broadcast-add is already at roofline there.
    if not force_kernel and batch * m * itemsize < (1 << 20):
        return (d1[:, None, :].astype(out_dtype)
                + d2[:, :, None].astype(out_dtype)).reshape(batch, m)

    n_in = n1 + n2

    # Constant one-hot selection matrix: column j = i2*n1 + i1 picks d1[:, i1] and d2[:, i2].
    j = np.arange(m)
    sel_np = np.zeros((n_in, m), dtype=np.float32)
    sel_np[j % n1, j] = 1.0
    sel_np[n1 + (j // n1), j] = 1.0
    sel = jnp.asarray(sel_np, dtype=out_dtype)

    # One narrow (lane-padded) input block -> one input DMA per grid step.
    d12 = jnp.concatenate([d1.astype(out_dtype), d2.astype(out_dtype)], axis=1)

    vmem_limit = _vmem_limit_bytes()
    bt = _choose_batch_tile(batch, n_in, m, itemsize, vmem_limit)
    grid = (pl.cdiv(batch, bt),)                      # ragged tail masked by Pallas

    cost = pl.CostEstimate(
        flops=2 * batch * n_in * m,
        transcendentals=0,
        bytes_accessed=(batch * n_in + n_in * m + batch * m) * itemsize,
    )

    return pl.pallas_call(
        product_kernel,
        out_shape=jax.ShapeDtypeStruct((batch, m), out_dtype),
        grid_spec=pltpu.PrefetchScalarGridSpec(
            num_scalar_prefetch=0,
            grid=grid,
            in_specs=[
                pl.BlockSpec((n_in, m), lambda i: (0, 0)),    # selection matrix (VMEM-resident)
                pl.BlockSpec((bt, n_in), lambda i: (i, 0)),   # [dists1 | dists2] rows
            ],
            out_specs=pl.BlockSpec((bt, m), lambda i: (i, 0)),  # lane-dense flattened output
        ),
        compiler_params=pltpu.CompilerParams(
            dimension_semantics=("parallel",),
            vmem_limit_bytes=vmem_limit,
        ),
        cost_estimate=cost,
    )(sel, d12)


if __name__ == "__main__":
    # ProductTensor has no learnable parameters; its forward consumes the two
    # children's per-batch log-density vectors.
    key = jax.random.PRNGKey(0)
    B, N1, N2 = 64, 8, 16                             # batch, child sizes
    k1, k2 = jax.random.split(key)
    dists1 = jax.random.normal(k1, (B, N1), dtype=jnp.float32)
    dists2 = jax.random.normal(k2, (B, N2), dtype=jnp.float32)

    # pure-JAX reference mirroring the torch broadcast + view
    ref = (dists1[:, None, :] + dists2[:, :, None]).reshape(B, N1 * N2)

    # Pallas kernel path (forced, since this test case is below the tiny-problem fallback).
    out_kernel = jax.block_until_ready(
        product_forward([dists1, dists2], params=None, force_kernel=True))
    assert out_kernel.shape == (B, N1 * N2)
    np.testing.assert_allclose(np.asarray(out_kernel), np.asarray(ref),
                               rtol=1e-6, atol=1e-6)

    # Default dispatch (XLA fallback for sub-MiB outputs) must match as well.
    out_default = jax.block_until_ready(product_forward([dists1, dists2], params=None))
    np.testing.assert_allclose(np.asarray(out_default), np.asarray(ref),
                               rtol=1e-6, atol=1e-6)

    print("KERNEL_OK")
</pallas_src>

<mosaic_0001>
module attributes {stable_mosaic.version = 11 : i64} {
  func.func @product_kernel(%arg0: i32, %arg1: memref<24x128xf32, #tpu.memory_space<vmem>>, %arg2: memref<64x24xf32, #tpu.memory_space<vmem>>, %arg3: memref<64x128xf32, #tpu.memory_space<vmem>>) attributes {dimension_semantics = [#tpu.dimension_semantics<parallel>], iteration_bounds = array<i64: 1>, scalar_prefetch = 0 : i64, scratch_operands = 0 : i64, tpu.core_type = #tpu.core_type<tc>, window_params = [{pipeline_mode = #tpu.pipeline_mode<synchronous>, transform_indices = @transform_0, window_bounds = array<i64: 24, 128>}, {transform_indices = @transform_1, window_bounds = array<i64: 64, 24>}, {transform_indices = @transform_2, window_bounds = array<i64: 64, 128>}]} {
    %c0 = arith.constant 0 : index
    %c0_0 = arith.constant 0 : index
    %0 = vector.load %arg2[%c0, %c0_0] : memref<64x24xf32, #tpu.memory_space<vmem>>, vector<64x24xf32>
    %c0_1 = arith.constant 0 : index
    %c0_2 = arith.constant 0 : index
    %1 = vector.load %arg1[%c0_1, %c0_2] : memref<24x128xf32, #tpu.memory_space<vmem>>, vector<24x128xf32>
    %cst = arith.constant dense<0.000000e+00> : vector<64x128xf32>
    %2 = tpu.matmul %0, %1, %cst {dimension_numbers = #tpu.dot_dimension_numbers<[1], [0], [0], [1], [0, 0, 1, 1], [], []>, precision = #tpu.contract_precision<fp32>} : vector<64x24xf32>, vector<24x128xf32>, vector<64x128xf32> -> vector<64x128xf32>
    %c0_3 = arith.constant 0 : index
    %c0_4 = arith.constant 0 : index
    %3 = vector.load %arg3[%c0_3, %c0_4] : memref<64x128xf32, #tpu.memory_space<vmem>>, vector<64x128xf32>
    tpu.vector_store %arg3[%c0_3, %c0_4], %2 {strides = array<i32>} : memref<64x128xf32, #tpu.memory_space<vmem>>, vector<64x128xf32>,
    return
  }
  func.func @transform_0(%arg0: i32) -> (i32, i32) {
    %c0_i32 = arith.constant 0 : i32
    %c0_i32_0 = arith.constant 0 : i32
    %c0_i32_1 = arith.constant 0 : i32
    return %c0_i32, %c0_i32_0 : i32, i32
  }
  func.func @transform_1(%arg0: i32) -> (i32, i32) {
    %c0_i32 = arith.constant 0 : i32
    %c0_i32_0 = arith.constant 0 : i32
    return %arg0, %c0_i32 : i32, i32
  }
  func.func @transform_2(%arg0: i32) -> (i32, i32) {
    %c0_i32 = arith.constant 0 : i32
    %c0_i32_0 = arith.constant 0 : i32
    return %arg0, %c0_i32 : i32, i32
  }
}

</mosaic_0001>

<bundles_post_ra>
// kernel: tpu_custom_call.1
= control target key start
LH: loop header
LB: loop body
LE: loop exit
PB: predicated region body
PF: predicated region fallthrough
CT: control target
= control target key end

     0   :  { %vm23_vm0 = vcmask 195584   ;;  %s1296_s0 = inlined_call_operand.vmem [shape: f32[24,128], index: 0, kind: input, shape index: {}]   ;;  %s1297_s1 = inlined_call_operand.vmem [shape: f32[64,24], index: 1, kind: input, shape index: {}]   ;;  %s1298_s2 = inlined_call_operand.hbm [shape: f32[64,128], index: 2, kind: output, shape index: {}]  }
   0x1   :  { %v20_v0 = vld [vmem:[%s1296_s0] sm:$0xff]  ;;  %v21_v1 = vld [vmem:[%s1296_s0 + $0x8] sm:$0xff]  ;;  %v1137_v2 = vld [vmem:[%s1296_s0 + $0x10] sm:$0xff] }
   0x2   :  { %v49_v3 = vand.u32 4294901760, %v20_v0  ;;  %v52_v4 = vand.u32 4294901760, %v21_v1  ;;  %v12_v5 = vld [vmem:[%s1297_s1] sm:$0xff]  ;;  %v13_v6 = vld [vmem:[%s1297_s1 + $0x8] sm:$0xff]  ;;  %v14_v7 = vld [vmem:[%s1297_s1 + $0x10] sm:$0xff]  ;;  %v1149_v8 = vand.u32 4294901760, %v1137_v2 }
   0x3   :  { %v25_v9 = vsel %vm23_vm0, %v12_v5, 0  ;;  %v28_v10 = vsel %vm23_vm0, %v13_v6, 0  ;;  %v31_v11 = vsel %vm23_vm0, %v14_v7, 0  ;;  %v15_v12 = vld [vmem:[%s1297_s1 + $0x18] sm:$0xff]  ;;  %v16_v13 = vld [vmem:[%s1297_s1 + $0x20] sm:$0xff]  ;;  %v17_v18 = vld [vmem:[%s1297_s1 + $0x28] sm:$0xff] }
   0x4   :  { %v1160_v14 = vpack.c.bf16 %v52_v4, %v49_v3  ;;  %v1162_v15 = vand.u32 4294901760, %v25_v9  ;;  %v1164_v16 = vand.u32 4294901760, %v28_v10  ;;  %v1166_v17 = vsub.f32 %v20_v0, %v49_v3 }
   0x5   :  { %7 = vsyncpa [#allocation3], 0  ;;  %v1171_v19 = vsub.f32 %v21_v1, %v52_v4  ;;  %v1173_v20 = vand.u32 4294901760, %v31_v11  ;;  %v34_v21 = vsel %vm23_vm0, %v15_v12, 0  ;;  %v37_v22 = vsel %vm23_vm0, %v16_v13, 0  ;;  %v18_v47 = vld [vmem:[%s1297_s1 + $0x30] sm:$0xff] }
   0x6   :  { %1032 = vmatprep.subr.bf16.mxu0 %v1160_v14  ;;  %1020 = vmatprep.subr.bf16.mxu1 %v1160_v14  ;;  %v1180_v23 = vsub.f32 %v25_v9, %v1162_v15  ;;  %v1183_v24 = vsub.f32 %v28_v10, %v1164_v16  ;;  %v199_v25 = vand.u32 4294901760, %v1166_v17  ;;  %v1186_v26 = vand.u32 4294901760, %v34_v21  ;;  %v19_v48 = vld [vmem:[%s1297_s1 + $0x38] sm:$0xff]  ;;  %s1110_s1 = smov [#allocation2]  }
   0x7   :  { %1034 = vmatpush3.bf16.msra.mxu0 %v1160_v14  ;;  %1022 = vmatpush3.bf16.msra.mxu1 %v1160_v14  ;;  %v206_v27 = vand.u32 4294901760, %v1171_v19  ;;  %v1192_v28 = vsub.f32 %v31_v11, %v1173_v20  ;;  %v1194_v29 = vand.u32 4294901760, %v37_v22  ;;  %v40_v30 = vsel %vm23_vm0, %v17_v18, 0  ;;  %s834_s30 = sshll.u32 %s1110_s1, 4  ;;  %s835_s30 = int_to_ptr.vmem [resolvable:$true] %s834_s30 }
   0x8   :  { %969 = vmatprep.subr.mxu0 %v1149_v8  ;;  %v118_v31 = vand.u32 4294901760, %v1180_v23  ;;  %915 = vmatprep.subr.mxu1 %v1149_v8  ;;  %v128_v32 = vand.u32 4294901760, %v1183_v24  ;;  %v200_v33 = vsub.f32 %v1166_v17, %v199_v25  ;;  %v1203_v34 = vsub.f32 %v34_v21, %v1186_v26  ;;  %s1086_s3 = scalar_lea.vmem %s835_s30, 1024  ;;  %p1091_p1 = scmp.lt.s32.totalorder %s835_s30, %s835_s30 }
   0x9   :  { %v207_v35 = vsub.f32 %v1171_v19, %v206_v27  ;;  %v1035_v36 = vpack.c.bf16 %v206_v27, %v199_v25  ;;  %v138_v37 = vand.u32 4294901760, %v1192_v28  ;;  %v1208_v38 = vsub.f32 %v37_v22, %v1194_v29  ;;  %p1087_p0 = scmp.ne.s32.totalorder %s835_s30, %s1086_s3  ;;  %p1092_p2 = scmp.lt.s32.totalorder %s1086_s3, %s1086_s3 }
   0xa   :  { %971 = vmatprep.mubr.f32.mxu0 %v118_v31  ;;  %v119_v39 = vsub.f32 %v1180_v23, %v118_v31  ;;  %v129_v40 = vsub.f32 %v1183_v24, %v128_v32  ;;  %v201_v41 = vand.u32 4294901760, %v200_v33  ;;  %v148_v42 = vand.u32 4294901760, %v1203_v34 }
   0xb   :  { %970 = vmatpush3.msra.mxu0 %v1149_v8  ;;  %916 = vmatpush3.msra.mxu1 %v1149_v8  ;;  %v208_v43 = vand.u32 4294901760, %v207_v35  ;;  %v139_v44 = vsub.f32 %v1192_v28, %v138_v37  ;;  %v158_v45 = vand.u32 4294901760, %v1208_v38  ;;  %v1217_v46 = vand.u32 4294901760, %v40_v30  ;;  %p1093_p3 = por %p1092_p2, %p1091_p1 }
   0xc   :  { %972 = vmatmul.mubr.f32.vlgmr.msra.gmra.mrb[0].mxu0 %v128_v32  ;;  %v120_v49 = vand.u32 4294901760, %v119_v39  ;;  %v130_v50 = vand.u32 4294901760, %v129_v40  ;;  %1036 = vmatprep.subr.bf16.mxu0 %v1035_v36  ;;  %v149_v51 = vsub.f32 %v1203_v34, %v148_v42  ;;  %v1228_v52 = vsub.f32 %v1137_v2, %v1149_v8 }
   0xd   :  { %v1023_v53 = vpack.c.bf16 %v208_v43, %v201_v41  ;;  %974 = vmatprep.mubr.f32.mxu0 %v138_v37  ;;  %1038 = vmatpush3.bf16.msra.mxu0 %v1035_v36  ;;  %v140_v54 = vand.u32 4294901760, %v139_v44  ;;  %v1231_v55 = vsub.f32 %v40_v30, %v1217_v46  ;;  %v159_v56 = vsub.f32 %v1208_v38, %v158_v45  ;;  %p1094_p4 = pnand %p1093_p3, %p1087_p0 }
   0xe   :  { %917 = vmatprep.mubr.f32.mxu1 %v120_v49  ;;  %v213_v57 = vand.u32 4294901760, %v1228_v52  ;;  %v43_v58 = vsel %vm23_vm0, %v18_v47, 0  ;;  %v46_v59 = vsel %vm23_vm0, %v19_v48, 0  ;;  %v150_v60 = vand.u32 4294901760, %v149_v51 }
   0xf   :  { %918 = vmatmul.mubr.f32.vlgmr.msra.gmra.mrb[0].mxu1 %v130_v50  ;;  %1024 = vmatprep.subr.bf16.mxu1 %v1023_v53  ;;  %v168_v61 = vand.u32 4294901760, %v1231_v55  ;;  %v1238_v62 = vand.u32 4294901760, %v43_v58  ;;  %v1240_v63 = vand.u32 4294901760, %v46_v59  ;;  %v160_v0 = vand.u32 4294901760, %v159_v56 }
  0x10   :  { %1026 = vmatpush3.bf16.msra.mxu1 %v1023_v53  ;;  %975 = vmatmul.mubr.f32.gmra.mrb[2].mxu0 %v148_v42  ;;  %v214_v1 = vsub.f32 %v1228_v52, %v213_v57  ;;  %v1027_v10 = vpack.c.bf16 %v1171_v19, %v1166_v17 }
  0x11   :  { %920 = vmatprep.mubr.f32.mxu1 %v140_v54  ;;  %977 = vmatprep.mubr.f32.mxu0 %v158_v45  ;;  %v169_v2 = vsub.f32 %v1231_v55, %v168_v61  ;;  %v177_v3 = vsub.f32 %v43_v58, %v1238_v62  ;;  %v187_v4 = vsub.f32 %v46_v59, %v1240_v63 }
  0x12   :  { %v215_v5 = vand.u32 4294901760, %v214_v1  ;;  %987 = vmatprep.subr.mxu0 %v213_v57 }
  0x13   :  { %921 = vmatmul.mubr.f32.gmra.mrb[2].mxu1 %v150_v60  ;;  %v170_v6 = vand.u32 4294901760, %v169_v2  ;;  %v178_v7 = vand.u32 4294901760, %v177_v3  ;;  %988 = vmatpush3.msra.mxu0 %v213_v57  ;;  %v188_v9 = vand.u32 4294901760, %v187_v4 }
  0x14   :  { %978 = vmatmul.mubr.f32.gmra.mrb[4].mxu0 %v168_v61  ;;  %923 = vmatprep.mubr.f32.mxu1 %v160_v0 }
  0x15   :  { %933 = vmatprep.subr.mxu1 %v215_v5  ;;  %980 = vmatprep.mubr.f32.mxu0 %v178_v7  ;;  %v179_v11 = vsub.f32 %v177_v3, %v178_v7  ;;  %v189_v12 = vsub.f32 %v187_v4, %v188_v9 }
  0x16   :  { %934 = vmatpush3.msra.mxu1 %v215_v5  ;;  %1040 = vmatprep.subr.bf16.mxu0 %v1160_v14 }
  0x17   :  { %924 = vmatmul.mubr.f32.gmra.mrb[4].mxu1 %v170_v6  ;;  %v180_v13 = vand.u32 4294901760, %v179_v11  ;;  %v190_v18 = vand.u32 4294901760, %v189_v12  ;;  %1028 = vmatprep.subr.bf16.mxu1 %v1027_v10 }
  0x18   :  { %981 = vmatmul.mubr.f32.gmra.mrb[6].mxu0 %v188_v9 }
  0x19   :  { %926 = vmatprep.mubr.f32.mxu1 %v180_v13  ;;  %989 = vmatprep.mubr.f32.mxu0 %v1162_v15 }
  0x1b   :  { %927 = vmatmul.mubr.f32.gmra.mrb[6].mxu1 %v190_v18 }
  0x1c   :  { %990 = vmatmul.mubr.f32.vlgmr.msra.gmra.mrb[0].mxu0 %v1164_v16  ;;  %935 = vmatprep.mubr.f32.mxu1 %v1162_v15 }
  0x1d   :  { %992 = vmatprep.mubr.f32.mxu0 %v1173_v20  ;;  %1042 = vmatpush3.bf16.msra.mxu0 %v1160_v14 }
  0x1e   :  { %1005 = vmatprep.subr.mxu0 %v1149_v8 }
  0x1f   :  { %936 = vmatmul.mubr.f32.vlgmr.msra.gmra.mrb[0].mxu1 %v1164_v16 }
  0x20   :  { %1030 = vmatpush3.bf16.msra.mxu1 %v1027_v10  ;;  %993 = vmatmul.mubr.f32.gmra.mrb[2].mxu0 %v1186_v26 }
  0x21   :  { %938 = vmatprep.mubr.f32.mxu1 %v1173_v20  ;;  %995 = vmatprep.mubr.f32.mxu0 %v1194_v29 }
  0x22   :  { %951 = vmatprep.subr.mxu1 %v1228_v52  ;;  %1006 = vmatpush3.msra.mxu0 %v1149_v8 }
  0x23   :  { %939 = vmatmul.mubr.f32.gmra.mrb[2].mxu1 %v1186_v26 }
  0x24   :  { %996 = vmatmul.mubr.f32.gmra.mrb[4].mxu0 %v1217_v46  ;;  %941 = vmatprep.mubr.f32.mxu1 %v1194_v29 }
  0x25   :  { %952 = vmatpush3.msra.mxu1 %v1228_v52  ;;  %998 = vmatprep.mubr.f32.mxu0 %v1238_v62 }
  0x27   :  { %942 = vmatmul.mubr.f32.gmra.mrb[4].mxu1 %v1217_v46 }
  0x28   :  { %999 = vmatmul.mubr.f32.gmra.mrb[6].mxu0 %v1240_v63  ;;  %944 = vmatprep.mubr.f32.mxu1 %v1238_v62 }
  0x29   :  { %1007 = vmatprep.mubr.f32.mxu0 %v1162_v15 }
  0x2b   :  { %945 = vmatmul.mubr.f32.gmra.mrb[6].mxu1 %v1240_v63 }
  0x2c   :  { %1008 = vmatmul.mubr.f32.vlgmr.msra.gmra.mrb[0].mxu0 %v1164_v16  ;;  %953 = vmatprep.mubr.f32.mxu1 %v1180_v23 }
  0x2d   :  { %1010 = vmatprep.mubr.f32.mxu0 %v1173_v20 }
  0x2f   :  { %954 = vmatmul.mubr.f32.vlgmr.msra.gmra.mrb[0].mxu1 %v1183_v24 }
  0x30   :  { %1011 = vmatmul.mubr.f32.gmra.mrb[2].mxu0 %v1186_v26  ;;  %956 = vmatprep.mubr.f32.mxu1 %v1192_v28 }
  0x31   :  { %1013 = vmatprep.mubr.f32.mxu0 %v1194_v29 }
  0x33   :  { %957 = vmatmul.mubr.f32.gmra.mrb[2].mxu1 %v1203_v34 }
  0x34   :  { %1014 = vmatmul.mubr.f32.gmra.mrb[4].mxu0 %v1217_v46  ;;  %959 = vmatprep.mubr.f32.mxu1 %v1208_v38 }
  0x35   :  { %1016 = vmatprep.mubr.f32.mxu0 %v1238_v62 }
  0x37   :  { %960 = vmatmul.mubr.f32.gmra.mrb[4].mxu1 %v1231_v55 }
  0x38   :  { %1017 = vmatmul.mubr.f32.gmra.mrb[6].mxu0 %v1240_v63  ;;  %962 = vmatprep.mubr.f32.mxu1 %v177_v3 }
  0x3b   :  { %963 = vmatmul.mubr.f32.gmra.mrb[6].mxu1 %v187_v4 }
  0xff   :  { %v1009_v8 = vpop.f32.mrb[0].mxu0 }
 0x100   :  { %v775_v14 = vpop.f32.mrb[1].mxu0 }
 0x102   :  { %v955_v15 = vpop.f32.mrb[0].mxu1 }
 0x103   :  { %v1043_v16 = vadd.f32 %v1009_v8, %v955_v15  ;;  %v398_v17 = vpop.f32.mrb[1].mxu1  ;;  %v1012_v19 = vpop.f32.mrb[2].mxu0 }
 0x104   :  { %v1044_v20 = vadd.f32 %v775_v14, %v398_v17  ;;  %v787_v21 = vpop.f32.mrb[3].mxu0 }
 0x105   :  { %822 = vst [vmem:[#allocation2 + $0x8] sm:$0xff] %v1043_v16 }
 0x106   :  { %821 = vst [vmem:[#allocation2] sm:$0xff] %v1044_v20  ;;  %v958_v22 = vpop.f32.mrb[2].mxu1 }
 0x107   :  { %v1045_v23 = vadd.f32 %v1012_v19, %v958_v22  ;;  %v412_v24 = vpop.f32.mrb[3].mxu1  ;;  %v1015_v25 = vpop.f32.mrb[4].mxu0 }
 0x108   :  { %v1046_v26 = vadd.f32 %v787_v21, %v412_v24  ;;  %v799_v27 = vpop.f32.mrb[5].mxu0 }
 0x109   :  { %824 = vst [vmem:[#allocation2 + $0x18] sm:$0xff] %v1045_v23 }
 0x10a   :  { %823 = vst [vmem:[#allocation2 + $0x10] sm:$0xff] %v1046_v26  ;;  %v961_v28 = vpop.f32.mrb[4].mxu1 }
 0x10b   :  { %v1047_v29 = vadd.f32 %v1015_v25, %v961_v28  ;;  %v426_v30 = vpop.f32.mrb[5].mxu1  ;;  %v1018_v31 = vpop.f32.mrb[6].mxu0 }
 0x10c   :  { %v1048_v32 = vadd.f32 %v799_v27, %v426_v30  ;;  %v811_v33 = vpop.f32.mrb[7].mxu0 }
 0x10d   :  { %826 = vst [vmem:[#allocation2 + $0x28] sm:$0xff] %v1047_v29 }
 0x10e   :  { %825 = vst [vmem:[#allocation2 + $0x20] sm:$0xff] %v1048_v32  ;;  %v964_v34 = vpop.f32.mrb[6].mxu1 }
 0x10f   :  { %v1049_v35 = vadd.f32 %v1018_v31, %v964_v34  ;;  %v440_v36 = vpop.f32.mrb[7].mxu1 }
 0x110   :  { %v1050_v37 = vadd.f32 %v811_v33, %v440_v36 }
 0x111   :  { %828 = vst [vmem:[#allocation2 + $0x38] sm:$0xff] %v1049_v35 }
 0x112   :  { %827 = vst [vmem:[#allocation2 + $0x30] sm:$0xff] %v1050_v37 }
 0x113   :  { %1097 = shalt.err (!%p1094_p4)
}
 0x114   :  { %s1098_s6 = scalar_lea.hbm %s1298_s2, 1024 }
 0x115   :  { %p1099_p5 = scmp.ne.s32.totalorder %s1298_s2, %s1098_s6  ;;  %p1102_p6 = scmp.lt.u32.totalorder %s1098_s6, %s1298_s2 }
 0x117   :  { %p1104_p7 = pnand %p1102_p6, %p1099_p5 }
 0x119   :  { %1107 = shalt.err (!%p1104_p7)
}
 0x11a   :  { %s1111_s11 = smov 128   ;;  %s1112_s12 = smov 8  }
 0x11b   :  { %840 = dma.vmem_to_hbm [thread:$0]  %s835_s30, 1024, %s1298_s2, [#allocation3], %s1111_s11, %s1111_s11, %s1112_s12  }
 0x11c   :  { %1108 = dma.done.wait [#allocation3], 1024  }
 0x11d   :  { %1109 = vsyncadd [#allocation3], 4294966272 }
 0x11e   :  { %844 = vsyncpa [#allocation3], 1 }

</bundles_post_ra>
